<compile_context>
chip_gen: v7x
topology: tpu7x:2x2x1
jax: 0.10.0
libtpu: 0.0.40
codegen_flags: <defaults>
</compile_context>

<pallas_src>
import functools

import jax
import jax.numpy as jnp
from jax import lax
from jax.experimental import pallas as pl
from jax.experimental.pallas import tpu as pltpu

ALPHA = 0.8
GAMMA = 2
LANES = 128
SUBLANES = 8
MAX_TILE_ROWS = 4096   # 4096 x 128 f32 = 2 MiB per input per pipeline buffer
NUM_SPLITS = 2         # leading "parallel" grid axis -> both TensorCores on v7x


def _focal_loss_kernel(x_ref, t_ref, o_ref, *, n_total, block_elems, need_mask):
    c = pl.program_id(0)   # core-split index ("parallel")
    i = pl.program_id(1)   # reduction step within this split ("arbitrary")

    @pl.when(i == 0)
    def _():
        o_ref[...] = jnp.zeros_like(o_ref)

    x = x_ref[...].astype(jnp.float32)
    t = t_ref[...].astype(jnp.float32)

    # BCE-with-logits via one softplus per element:
    #   -log(p) = softplus(x) - x ,   -log(1-p) = softplus(x)
    # with PyTorch's binary_cross_entropy -100 clamp applied per log term.
    # (Deliberately more accurate than the PyTorch module for 17 < |x| < 100,
    # where its f32 sigmoid saturates and hits the clamp early.)
    sp = jax.nn.softplus(x)
    neg_log_p = jnp.minimum(sp - x, 100.0)
    neg_log_1mp = jnp.minimum(sp, 100.0)
    bce = neg_log_1mp + t * (neg_log_p - neg_log_1mp)

    def _accumulate(vals):
        # (tile_rows,128) -> (tile_rows//8, 8, 128) is a free re-view; the sum
        # over the leading axis is pure per-vreg VPU adds into a single-vreg
        # (8,128) partial sum held in the resident output block.
        o_ref[...] += vals.reshape(-1, SUBLANES, LANES).sum(axis=0)[None]

    if need_mask:
        # Valid elements remaining in this block (scalar): <= 0 for duplicated
        # fully-out-of-range blocks, >= block_elems for full blocks.
        # NOTE: int32 index math; assumes n_total < 2**31 elements.
        g = c * pl.num_programs(1) + i
        n_valid = n_total - g * block_elems

        @pl.when(n_valid >= block_elems)
        def _():
            _accumulate(bce)

        @pl.when(n_valid < block_elems)
        def _():
            # Mask is applied to bce BEFORE the reduce (NaN-safe select against
            # padded / Pallas-padded garbage rows).
            local = (lax.broadcasted_iota(jnp.int32, bce.shape, 0) * LANES
                     + lax.broadcasted_iota(jnp.int32, bce.shape, 1))
            _accumulate(jnp.where(local < n_valid, bce, 0.0))
    else:
        _accumulate(bce)


def focal_loss(inputs: jax.Array, targets: jax.Array,
               alpha: float = ALPHA, gamma: float = GAMMA,
               *, _max_tile_rows: int = MAX_TILE_ROWS) -> jax.Array:
    """Pallas TPU implementation of FocalLoss.forward.

    `targets` may be any dtype (bool/int8/bf16/f32); it is cast in-kernel, so
    keeping it narrow directly cuts HBM traffic on this memory-bound kernel.
    Note: the `smooth` argument of the PyTorch module is unused by its forward.
    """
    x = inputs.reshape(-1)          # native dtypes; casts happen in-kernel
    t = targets.reshape(-1)
    n_total = x.shape[0]

    # Pad (<= 1023 elems) to a multiple of 8*128 so the flat vector views as
    # (rows, 128) with rows % 8 == 0 (needed for the (8,128) partial-sum view).
    pad = (-n_total) % (SUBLANES * LANES)
    if pad:
        x = jnp.pad(x, (0, pad))
        t = jnp.pad(t, (0, pad))
    rows = (n_total + pad) // LANES
    x2 = x.reshape(rows, LANES)
    t2 = t.reshape(rows, LANES)

    # Large tiles to amortize per-grid-step overhead; full-extent block when
    # the whole array is smaller than one tile.
    tile_rows = rows if rows <= _max_tile_rows else _max_tile_rows
    assert tile_rows % SUBLANES == 0
    num_tiles = pl.cdiv(rows, tile_rows)

    # Leading "parallel" axis: splits the reduction across TensorCores on v7x;
    # a harmless sequential loop on single-core v5e/v6e.
    num_splits = min(NUM_SPLITS, num_tiles)
    steps = pl.cdiv(num_tiles, num_splits)
    block_elems = tile_rows * LANES
    need_mask = (num_splits * steps * block_elems) != n_total

    if num_splits * steps == num_tiles:
        in_map = lambda c, i: (c * steps + i, 0)
    else:
        # Rounding num_tiles up to num_splits*steps leaves duplicated trailing
        # blocks; clamp them onto the last real tile (their contribution is
        # zero-masked in the kernel).
        last_tile = num_tiles - 1
        in_map = lambda c, i: (jnp.minimum(c * steps + i, last_tile), 0)

    kernel = functools.partial(
        _focal_loss_kernel, n_total=n_total, block_elems=block_elems,
        need_mask=need_mask)

    # Per-split (8,128) partial sums; lane-dense output, written once per split.
    partials = pl.pallas_call(
        kernel,
        out_shape=jax.ShapeDtypeStruct((num_splits, SUBLANES, LANES), jnp.float32),
        grid_spec=pltpu.PrefetchScalarGridSpec(
            num_scalar_prefetch=0,
            grid=(num_splits, steps),
            in_specs=[
                # Sweep candidate: pipeline_mode=pl.Buffered(3) (<=5% expected).
                pl.BlockSpec((tile_rows, LANES), in_map),
                pl.BlockSpec((tile_rows, LANES), in_map),
            ],
            out_specs=pl.BlockSpec((1, SUBLANES, LANES), lambda c, i: (c, 0, 0)),
        ),
        compiler_params=pltpu.CompilerParams(
            dimension_semantics=("parallel", "arbitrary"),
            vmem_limit_bytes=32 * 1024 * 1024),
    )(x2, t2)

    # Tiny epilogue in plain XLA over the summed per-core partials.
    # (f32 n_total loses integer precision above 2^24 elems; ~1e-7 rel. error.)
    mean_bce = jnp.sum(partials) / jnp.float32(n_total)
    bce_exp = jnp.exp(-mean_bce)
    one_minus = 1.0 - bce_exp
    focal_w = one_minus * one_minus if float(gamma) == 2.0 else one_minus ** gamma
    return alpha * focal_w * mean_bce


def _focal_loss_ref(inputs, targets, alpha=ALPHA, gamma=GAMMA):
    p = jax.nn.sigmoid(inputs.reshape(-1).astype(jnp.float32))
    t = targets.reshape(-1).astype(jnp.float32)
    log_p = jnp.maximum(jnp.log(p), -100.0)
    log_1mp = jnp.maximum(jnp.log(1.0 - p), -100.0)
    bce = jnp.mean(-(t * log_p + (1.0 - t) * log_1mp))
    return alpha * (1.0 - jnp.exp(-bce)) ** gamma * bce


if __name__ == "__main__":
    key = jax.random.PRNGKey(0)
    k1, k2, k3, k4, k5, k6 = jax.random.split(key, 6)

    # segmentation-style logits and binary targets, NCHW (128-aligned size)
    x = jax.random.normal(k1, (2, 4, 16, 16), dtype=jnp.float32)
    y = (jax.random.uniform(k2, (2, 4, 16, 16)) > 0.5).astype(jnp.float32)
    loss = jax.block_until_ready(focal_loss(x, y))
    ref = _focal_loss_ref(x, y)
    assert jnp.allclose(loss, ref, atol=1e-5, rtol=1e-5), (loss, ref)

    # non-128-aligned size + narrow (bf16) targets: edge-mask path, in-kernel cast
    x2 = jax.random.normal(k3, (3, 3, 13, 11), dtype=jnp.float32)
    y2 = (jax.random.uniform(k4, (3, 3, 13, 11)) > 0.5).astype(jnp.bfloat16)
    loss2 = jax.block_until_ready(focal_loss(x2, y2))
    ref2 = _focal_loss_ref(x2, y2)
    assert jnp.allclose(loss2, ref2, atol=1e-5, rtol=1e-5), (loss2, ref2)

    # multi-tile / two-split / clamped-duplicate-block paths (tiny tiles for test)
    x3 = jax.random.normal(k5, (3, 1024), dtype=jnp.float32)
    y3 = (jax.random.uniform(k6, (3, 1024)) > 0.5).astype(jnp.float32)
    loss3 = jax.block_until_ready(focal_loss(x3, y3, _max_tile_rows=8))
    ref3 = _focal_loss_ref(x3, y3)
    assert jnp.allclose(loss3, ref3, atol=1e-5, rtol=1e-5), (loss3, ref3)

    print("KERNEL_OK")
</pallas_src>

<mosaic_0001>
module attributes {stable_mosaic.version = 11 : i64} {
  func.func @_focal_loss_kernel(%arg0: i32, %arg1: i32, %arg2: memref<16x128xf32, #tpu.memory_space<vmem>>, %arg3: memref<16x128xf32, #tpu.memory_space<vmem>>, %arg4: memref<1x8x128xf32, #tpu.memory_space<vmem>>) attributes {dimension_semantics = [#tpu.dimension_semantics<parallel>, #tpu.dimension_semantics<arbitrary>], iteration_bounds = array<i64: 1, 1>, scalar_prefetch = 0 : i64, scratch_operands = 0 : i64, tpu.core_type = #tpu.core_type<tc>, window_params = [{transform_indices = @transform_0, window_bounds = array<i64: 16, 128>}, {transform_indices = @transform_1, window_bounds = array<i64: 16, 128>}, {transform_indices = @transform_2, window_bounds = array<i64: 1, 8, 128>}]} {
    %c0_i32 = arith.constant 0 : i32
    %0 = arith.cmpi eq, %arg1, %c0_i32 : i32
    %1 = arith.extui %0 : i1 to i32
    %c0_i32_0 = arith.constant 0 : i32
    %2 = arith.cmpi ne, %1, %c0_i32_0 : i32
    scf.if %2 {
      %cst_14 = arith.constant 0.000000e+00 : f32
      %33 = vector.broadcast %cst_14 : f32 to vector<1x8x128xf32>
      %c0_15 = arith.constant 0 : index
      %c0_16 = arith.constant 0 : index
      %c0_17 = arith.constant 0 : index
      %34 = vector.load %arg4[%c0_15, %c0_16, %c0_17] : memref<1x8x128xf32, #tpu.memory_space<vmem>>, vector<1x8x128xf32>
      tpu.vector_store %arg4[%c0_15, %c0_16, %c0_17], %33 {strides = array<i32>} : memref<1x8x128xf32, #tpu.memory_space<vmem>>, vector<1x8x128xf32>,
    } else {
    }
    %c0 = arith.constant 0 : index
    %c0_1 = arith.constant 0 : index
    %3 = vector.load %arg2[%c0, %c0_1] : memref<16x128xf32, #tpu.memory_space<vmem>>, vector<16x128xf32>
    %c0_2 = arith.constant 0 : index
    %c0_3 = arith.constant 0 : index
    %4 = vector.load %arg3[%c0_2, %c0_3] : memref<16x128xf32, #tpu.memory_space<vmem>>, vector<16x128xf32>
    %cst = arith.constant 0.000000e+00 : f32
    %5 = vector.broadcast %cst : f32 to vector<16x128xf32>
    %6 = arith.maximumf %3, %5 : vector<16x128xf32>
    %7 = vector.broadcast %cst : f32 to vector<16x128xf32>
    %8 = arith.subf %3, %7 : vector<16x128xf32>
    %9 = arith.cmpf one, %8, %8 : vector<16x128xf32>
    %10 = vector.broadcast %cst : f32 to vector<16x128xf32>
    %11 = arith.addf %3, %10 : vector<16x128xf32>
    %12 = math.absf %8 : vector<16x128xf32>
    %cst_4 = arith.constant 0.000000e+00 : f32
    %13 = vector.broadcast %cst_4 : f32 to vector<16x128xf32>
    %14 = arith.subf %13, %12 : vector<16x128xf32>
    %15 = math.exp %14 : vector<16x128xf32>
    %16 = math.log1p %15 : vector<16x128xf32>
    %17 = arith.addf %6, %16 : vector<16x128xf32>
    %18 = arith.select %9, %11, %17 : vector<16x128xi1>, vector<16x128xf32>
    %19 = arith.subf %18, %3 : vector<16x128xf32>
    %cst_5 = arith.constant 1.000000e+02 : f32
    %20 = vector.broadcast %cst_5 : f32 to vector<16x128xf32>
    %21 = arith.minimumf %19, %20 : vector<16x128xf32>
    %cst_6 = arith.constant 1.000000e+02 : f32
    %22 = vector.broadcast %cst_6 : f32 to vector<16x128xf32>
    %23 = arith.minimumf %18, %22 : vector<16x128xf32>
    %24 = arith.subf %21, %23 : vector<16x128xf32>
    %25 = arith.mulf %4, %24 : vector<16x128xf32>
    %26 = arith.addf %23, %25 : vector<16x128xf32>
    %c0_7 = arith.constant 0 : index
    %c0_8 = arith.constant 0 : index
    %c0_9 = arith.constant 0 : index
    %27 = vector.load %arg4[%c0_7, %c0_8, %c0_9] : memref<1x8x128xf32, #tpu.memory_space<vmem>>, vector<1x8x128xf32>
    %28 = vector.shape_cast %26 : vector<16x128xf32> to vector<2x8x128xf32>
    %cst_10 = arith.constant dense<0.000000e+00> : vector<8x128xf32>
    %29 = vector.multi_reduction <add>, %28, %cst_10 [0] : vector<2x8x128xf32> to vector<8x128xf32>
    %30 = vector.shape_cast %29 : vector<8x128xf32> to vector<1x8x128xf32>
    %31 = arith.addf %27, %30 : vector<1x8x128xf32>
    %c0_11 = arith.constant 0 : index
    %c0_12 = arith.constant 0 : index
    %c0_13 = arith.constant 0 : index
    %32 = vector.load %arg4[%c0_11, %c0_12, %c0_13] : memref<1x8x128xf32, #tpu.memory_space<vmem>>, vector<1x8x128xf32>
    tpu.vector_store %arg4[%c0_11, %c0_12, %c0_13], %31 {strides = array<i32>} : memref<1x8x128xf32, #tpu.memory_space<vmem>>, vector<1x8x128xf32>,
    return
  }
  func.func @transform_0(%arg0: i32, %arg1: i32) -> (i32, i32) {
    %c1_i32 = arith.constant 1 : i32
    %0 = arith.muli %arg0, %c1_i32 : i32
    %1 = arith.addi %0, %arg1 : i32
    %c0_i32 = arith.constant 0 : i32
    %c0_i32_0 = arith.constant 0 : i32
    return %1, %c0_i32 : i32, i32
  }
  func.func @transform_1(%arg0: i32, %arg1: i32) -> (i32, i32) {
    %c1_i32 = arith.constant 1 : i32
    %0 = arith.muli %arg0, %c1_i32 : i32
    %1 = arith.addi %0, %arg1 : i32
    %c0_i32 = arith.constant 0 : i32
    %c0_i32_0 = arith.constant 0 : i32
    return %1, %c0_i32 : i32, i32
  }
  func.func @transform_2(%arg0: i32, %arg1: i32) -> (i32, i32, i32) {
    %c0_i32 = arith.constant 0 : i32
    %c0_i32_0 = arith.constant 0 : i32
    %c0_i32_1 = arith.constant 0 : i32
    return %arg0, %c0_i32, %c0_i32_0 : i32, i32, i32
  }
}

</mosaic_0001>

<bundles_post_ra>
// kernel: tpu_custom_call.1
= control target key start
LH: loop header
LB: loop body
LE: loop exit
PB: predicated region body
PF: predicated region fallthrough
CT: control target
= control target key end

     0   :  { %7 = vsyncpa [#allocation3], 0  ;;  %s271_s0 = inlined_call_operand.hbm [shape: f32[16,128], index: 0, kind: input, shape index: {}]   ;;  %s272_s1 = inlined_call_operand.hbm [shape: f32[16,128], index: 1, kind: input, shape index: {}]   ;;  %s273_s2 = inlined_call_operand.hbm [shape: f32[1,8,128], index: 2, kind: output, shape index: {}]  }
   0x1   :  { %8 = vsyncpa [#allocation6], 0 }
   0x2   :  { %9 = vsyncpa [#allocation4], 0  ;;  %s215_s9 = smov [#allocation2]   ;;  %s143_s13 = scalar_lea.hbm %s271_s0, 256 }
   0x3   :  { %s19_s10 = sshll.u32 %s215_s9, 4  ;;  %p144_p0 = scmp.ne.s32.totalorder %s271_s0, %s143_s13  ;;  %s20_s10 = int_to_ptr.vmem [resolvable:$true] %s19_s10 }
   0x4   :  { %p147_p1 = scmp.lt.u32.totalorder %s143_s13, %s271_s0 }
   0x6   :  { %p149_p2 = pnand %p147_p1, %p144_p0 }
   0x8   :  { %152 = shalt.err (!%p149_p2)
}
   0x9   :  { %s153_s18 = scalar_lea.vmem %s20_s10, 256  ;;  %p158_p4 = scmp.lt.s32.totalorder %s20_s10, %s20_s10 }
   0xa   :  { %p154_p3 = scmp.ne.s32.totalorder %s20_s10, %s153_s18  ;;  %p159_p5 = scmp.lt.s32.totalorder %s153_s18, %s153_s18 }
   0xc   :  { %p160_p6 = por %p159_p5, %p158_p4 }
   0xe   :  { %p161_p7 = pnand %p160_p6, %p154_p3 }
  0x10   :  { %164 = shalt.err (!%p161_p7)
}
  0x11   :  { %s216_s19 = smov 128   ;;  %s217_s20 = smov 8  }
  0x12   :  { %25 = dma.hbm_to_vmem [thread:$0]  %s271_s0, 256, %s20_s10, [#allocation3], %s216_s19, %s216_s19, %s217_s20  }
  0x13   :  { %s218_s23 = smov [#allocation5]   ;;  %s165_s27 = scalar_lea.hbm %s272_s1, 256 }
  0x14   :  { %s35_s24 = sshll.u32 %s218_s23, 4  ;;  %p166_p8 = scmp.ne.s32.totalorder %s272_s1, %s165_s27  ;;  %s36_s24 = int_to_ptr.vmem [resolvable:$true] %s35_s24 }
  0x15   :  { %p169_p9 = scmp.lt.u32.totalorder %s165_s27, %s272_s1 }
  0x17   :  { %p171_p10 = pnand %p169_p9, %p166_p8 }
  0x19   :  { %174 = shalt.err (!%p171_p10)
}
  0x1a   :  { %s175_s4 = scalar_lea.vmem %s36_s24, 256  ;;  %p180_p12 = scmp.lt.s32.totalorder %s36_s24, %s36_s24 }
  0x1b   :  { %p176_p11 = scmp.ne.s32.totalorder %s36_s24, %s175_s4  ;;  %p181_p13 = scmp.lt.s32.totalorder %s175_s4, %s175_s4 }
  0x1d   :  { %p182_p0 = por %p181_p13, %p180_p12 }
  0x1f   :  { %p183_p1 = pnand %p182_p0, %p176_p11 }
  0x21   :  { %186 = shalt.err (!%p183_p1)
}
  0x22   :  { %41 = dma.hbm_to_vmem [thread:$0]  %s272_s1, 256, %s36_s24, [#allocation6], %s216_s19, %s216_s19, %s217_s20  }
  0x23   :  { %209 = dma.done.wait [#allocation3], 256  }
  0x24   :  { %210 = vsyncadd [#allocation3], 4294967040 }
  0x25   :  { %211 = dma.done.wait [#allocation6], 256  }
  0x26   :  { %212 = vsyncadd [#allocation6], 4294967040  ;;  %v57_v0 = vld [vmem:[#allocation2] sm:$0xff]  ;;  %v58_v1 = vld [vmem:[#allocation2 + $0x8] sm:$0xff]  ;;  %s219_s1 = smov [#allocation7]  }
  0x27   :  { %v67_v2 = vand.u32 2147483647, %v57_v0  ;;  %v68_v3 = vand.u32 2147483647, %v58_v1  ;;  %v61_v20 = vmax.f32 %v57_v0, 0.0  ;;  %v62_v23 = vmax.f32 %v58_v1, 0.0 }
  0x28   :  { %vm63_vm2 = vcmp.ne.f32.partialorder %v57_v0, %v57_v0  ;;  %vm64_vm3 = vcmp.ne.f32.partialorder %v58_v1, %v58_v1  ;;  %v59_v37 = vld [vmem:[#allocation5] sm:$0xff]  ;;  %v60_v39 = vld [vmem:[#allocation5 + $0x8] sm:$0xff]  ;;  %s119_s6 = sshll.u32 %s219_s1, 4  ;;  %s120_s6 = int_to_ptr.vmem [resolvable:$true] %s119_s6 }
  0x29   :  { %v69_v4 = vsub.f32 0.0, %v67_v2  ;;  %v70_v5 = vsub.f32 0.0, %v68_v3  ;;  %s187_s7 = scalar_lea.vmem %s120_s6, 128  ;;  %p192_p3 = scmp.lt.s32.totalorder %s120_s6, %s120_s6 }
  0x2a   :  { %p188_p2 = scmp.ne.s32.totalorder %s120_s6, %s187_s7  ;;  %p193_p4 = scmp.lt.s32.totalorder %s187_s7, %s187_s7 }
  0x2b   :  { %v71_v6 = vmul.f32 1.442695, %v69_v4  ;;  %v73_v7 = vmul.f32 1.442695, %v70_v5 }
  0x2c   :  { %p194_p5 = por %p193_p4, %p192_p3 }
  0x2d   :  { %135 = vpow2.f32 %v71_v6 }
  0x2e   :  { %137 = vpow2.f32 %v73_v7  ;;  %p195_p6 = pnand %p194_p5, %p188_p2 }
  0x37   :  { %v136_v8 = vpop.eup %135 }
  0x38   :  { %v138_v9 = vpop.eup %137  ;;  %v75_v10 = vadd.f32 1.0, %v136_v8  ;;  %v78_v12 = vmul.f32 -0.5, %v136_v8  ;;  %v81_v15 = vand.u32 2147483647, %v136_v8 }
  0x39   :  { %v84_v11 = vadd.f32 1.0, %v138_v9  ;;  %v87_v13 = vmul.f32 -0.5, %v138_v9  ;;  %v90_v17 = vand.u32 2147483647, %v138_v9 }
  0x3a   :  { %139 = vlog2.f32 %v75_v10  ;;  %v79_v14 = vadd.f32 1.0, %v78_v12  ;;  %vm82_vm0 = vcmp.lt.f32.partialorder %v81_v15, 0.0004427343 }
  0x3b   :  { %141 = vlog2.f32 %v84_v11  ;;  %v88_v16 = vadd.f32 1.0, %v87_v13  ;;  %vm91_vm1 = vcmp.lt.f32.partialorder %v90_v17, 0.0004427343 }
  0x3c   :  { %v80_v18 = vmul.f32 %v136_v8, %v79_v14 }
  0x3d   :  { %v89_v21 = vmul.f32 %v138_v9, %v88_v16 }
  0x44   :  { %v140_v19 = vpop.eup %139 }
  0x45   :  { %v142_v22 = vpop.eup %141  ;;  %v77_v24 = vmul.f32 0.6931472, %v140_v19 }
  0x46   :  { %v86_v25 = vmul.f32 0.6931472, %v142_v22 }
  0x47   :  { %v83_v26 = vsel %vm82_vm0, %v80_v18, %v77_v24 }
  0x48   :  { %v92_v27 = vsel %vm91_vm1, %v89_v21, %v86_v25  ;;  %v93_v28 = vadd.f32 %v83_v26, %v61_v20 }
  0x49   :  { %v94_v29 = vadd.f32 %v92_v27, %v62_v23 }
  0x4a   :  { %v95_v30 = vsel %vm63_vm2, %v57_v0, %v93_v28 }
  0x4b   :  { %v96_v31 = vsel %vm64_vm3, %v58_v1, %v94_v29  ;;  %v97_v32 = vsub.f32 %v95_v30, %v57_v0  ;;  %v101_v33 = vmin.f32 %v95_v30, 100.0 }
  0x4c   :  { %v98_v34 = vsub.f32 %v96_v31, %v58_v1  ;;  %v102_v35 = vmin.f32 %v96_v31, 100.0 }
  0x4d   :  { %v99_v36 = vmin.f32 %v97_v32, 100.0 }
  0x4e   :  { %v100_v38 = vmin.f32 %v98_v34, 100.0 }
  0x4f   :  { %v103_v40 = vsub.f32 %v99_v36, %v101_v33 }
  0x50   :  { %v104_v41 = vsub.f32 %v100_v38, %v102_v35 }
  0x51   :  { %v105_v42 = vmul.f32 %v103_v40, %v59_v37 }
  0x52   :  { %v106_v43 = vmul.f32 %v104_v41, %v60_v39 }
  0x53   :  { %v107_v44 = vadd.f32 %v105_v42, %v101_v33 }
  0x54   :  { %v108_v45 = vadd.f32 %v106_v43, %v102_v35 }
  0x56   :  { %v110_v46 = vadd.f32 %v108_v45, %v107_v44 }
  0x58   :  { %112 = vst [vmem:[#allocation7] sm:$0xff] %v110_v46 }
  0x59   :  { %198 = shalt.err (!%p195_p6)
}
  0x5a   :  { %s199_s10 = scalar_lea.hbm %s273_s2, 128 }
  0x5b   :  { %p200_p7 = scmp.ne.s32.totalorder %s273_s2, %s199_s10  ;;  %p203_p8 = scmp.lt.u32.totalorder %s199_s10, %s273_s2 }
  0x5d   :  { %p205_p9 = pnand %p203_p8, %p200_p7 }
  0x5f   :  { %208 = shalt.err (!%p205_p9)
}
  0x60   :  { %122 = dma.vmem_to_hbm [thread:$0]  %s120_s6, 128, %s273_s2, [#allocation4]  }
  0x61   :  { %213 = dma.done.wait [#allocation4], 128  }
  0x62   :  { %214 = vsyncadd [#allocation4], 4294967168 }
  0x63   :  { %126 = vsyncpa [#allocation3], 1 }
  0x64   :  { %127 = vsyncpa [#allocation6], 1 }
  0x65   :  { %128 = vsyncpa [#allocation4], 1 }

</bundles_post_ra>
